<compile_context>
chip_gen: v7x
topology: tpu7x:2x2x1
jax: 0.10.0
libtpu: 0.0.40
codegen_flags: <defaults>
</compile_context>

<pallas_src>
import numpy as np
import jax
import jax.numpy as jnp
from jax.experimental import pallas as pl
from jax.experimental.pallas import tpu as pltpu


# ----------------------------------------------------------------------------
# Constellation construction (trace-time constants / verification) — sionna QAM
# ----------------------------------------------------------------------------
def _pam_gray(b):
    if len(b) > 1:
        return (1 - 2 * b[0]) * (2 ** len(b[1:]) - _pam_gray(b[1:]))
    return 1 - 2 * b[0]


def qam_constellation(num_bits_per_symbol):
    assert num_bits_per_symbol % 2 == 0, "QAM needs an even number of bits/symbol"
    n = num_bits_per_symbol
    c = np.zeros(2 ** n, dtype=np.complex64)
    for i in range(2 ** n):
        b = np.array(list(np.binary_repr(i, n)), dtype=np.int16)
        c[i] = _pam_gray(b[0::2]) + 1j * _pam_gray(b[1::2])
    c = c / np.sqrt(np.mean(np.abs(c) ** 2))  # unit average energy (normalize=True)
    return c


def _qam_scale(num_bits_per_symbol):
    # 1 / sqrt(mean energy) of the unnormalized square QAM constellation.
    m = num_bits_per_symbol // 2
    return 1.0 / float(np.sqrt(2.0 * (4.0 ** m - 1.0) / 3.0))


def _round_up(x, m):
    return ((x + m - 1) // m) * m


# ----------------------------------------------------------------------------
# Pallas kernel
# ----------------------------------------------------------------------------
def _make_symbol_source_kernel(nbps, scale):
    m = nbps // 2
    mask = (1 << nbps) - 1
    scale = float(scale)

    def pam_gray_arith(bits_sub):
        # Gray-coded PAM value from m MSB-first bit planes (int32 {0,1}):
        #   f(m-1) = 1 - 2*b[m-1];  f(j) = (1-2*b[j]) * (2^(m-1-j) - f(j+1))
        val = (1 - 2 * bits_sub[m - 1]).astype(jnp.float32)
        for j in range(m - 2, -1, -1):
            sign = (1 - 2 * bits_sub[j]).astype(jnp.float32)
            val = sign * (float(2 ** (m - 1 - j)) - val)
        return val

    def kernel(raw_ref, bits_ref, idx_ref, re_ref, im_ref):
        raw = raw_ref[...]                       # (TILE_R, C) int32 uniform words
        idx = raw & mask                         # low nbps bits = MSB-first label
        idx_ref[...] = idx

        # Extract all nbps label bits from the single word plane (MSB first).
        bits = []
        for k in range(nbps):
            b = (idx >> (nbps - 1 - k)) & 1
            bits.append(b)
            bits_ref[k] = b.astype(jnp.float32)  # BinarySource emits real dtype

        # Separable Gray-QAM mapping: real from even bits, imag from odd bits.
        re_ref[...] = pam_gray_arith(bits[0::2]) * scale
        im_ref[...] = pam_gray_arith(bits[1::2]) * scale

    return kernel


# ----------------------------------------------------------------------------
# Wrapper (SymbolSource.forward equivalent)
# ----------------------------------------------------------------------------
def symbol_source(shape, num_bits_per_symbol, key):
    """shape: tuple of ints (requested output shape). Returns [symbols, indices, bits]."""
    shape = tuple(int(s) for s in shape)
    nbps = int(num_bits_per_symbol)
    assert nbps % 2 == 0 and nbps >= 2, "QAM needs an even number of bits/symbol"
    total = int(np.prod(shape))

    # Lane-dense internal slab: C is a multiple of 128 -> unmasked vector stores.
    C = 512
    r_needed = (total + C - 1) // C
    TILE_R = 256                       # keeps double-buffered tiles well under v7x VMEM
    if r_needed < TILE_R:
        TILE_R = max(8, _round_up(r_needed, 8))
    R = _round_up(r_needed, TILE_R)
    grid = (R // TILE_R,)

    # One uniform word per element; its low nbps bits are i.i.d. Bernoulli(0.5)
    # and serve as the MSB-first label bits (== BinarySource + MSB-weighted sum).
    raw = jax.random.randint(key, (R, C), 0, 1 << nbps, dtype=jnp.int32)

    kernel = _make_symbol_source_kernel(nbps, _qam_scale(nbps))

    out_shape = (
        jax.ShapeDtypeStruct((nbps, R, C), jnp.float32),  # bit planes
        jax.ShapeDtypeStruct((R, C), jnp.int32),          # symbol indices
        jax.ShapeDtypeStruct((R, C), jnp.float32),        # symbol real
        jax.ShapeDtypeStruct((R, C), jnp.float32),        # symbol imag
    )

    # Megacore sharding on real TPU; omit TPU compiler params on other backends
    # (e.g. interpret fallback) so the call stays portable.
    compiler_params = None
    if jax.default_backend() == "tpu":
        compiler_params = pltpu.CompilerParams(dimension_semantics=("parallel",))

    bits_p, idx_p, re_p, im_p = pl.pallas_call(
        kernel,
        grid=grid,
        in_specs=[pl.BlockSpec((TILE_R, C), lambda i: (i, 0))],
        out_specs=(
            pl.BlockSpec((nbps, TILE_R, C), lambda i: (0, i, 0)),
            pl.BlockSpec((TILE_R, C), lambda i: (i, 0)),
            pl.BlockSpec((TILE_R, C), lambda i: (i, 0)),
            pl.BlockSpec((TILE_R, C), lambda i: (i, 0)),
        ),
        out_shape=out_shape,
        compiler_params=compiler_params,
    )(raw)

    # Glue: assemble the module's outputs (drop the padding rows/lanes).
    symbols = jax.lax.complex(re_p, im_p).reshape(-1)[:total].reshape(shape)   # complex64
    indices = idx_p.reshape(-1)[:total].reshape(shape)                         # int32
    bits = (jnp.transpose(bits_p, (1, 2, 0))
            .reshape(-1, nbps)[:total]
            .reshape(shape + (nbps,)))                                         # float32
    return [symbols, indices, bits]


# ----------------------------------------------------------------------------
# Demo
# ----------------------------------------------------------------------------
if __name__ == "__main__":
    key = jax.random.PRNGKey(0)

    # `inputs` to SymbolSource.forward is the desired output shape.
    requested_shape = (2, 8, 128)
    num_bits_per_symbol = 4  # 16-QAM

    symbols, indices, bits = symbol_source(requested_shape, num_bits_per_symbol, key)
    jax.block_until_ready((symbols, indices, bits))

    # Sanity checks of the reproduced semantics.
    assert symbols.shape == requested_shape and symbols.dtype == jnp.complex64
    assert indices.shape == requested_shape and indices.dtype == jnp.int32
    assert bits.shape == requested_shape + (num_bits_per_symbol,) and bits.dtype == jnp.float32

    b_np = np.asarray(bits)
    idx_np = np.asarray(indices)
    sym_np = np.asarray(symbols)
    assert set(np.unique(b_np.astype(np.int32))) <= {0, 1}
    # index == MSB-first weighted sum of bits
    weights = 2 ** np.arange(num_bits_per_symbol - 1, -1, -1)
    assert np.array_equal(idx_np, (b_np.astype(np.int64) @ weights).astype(np.int32))
    # symbols == constellation gather of the indices (Gray-labelled, unit energy)
    const = qam_constellation(num_bits_per_symbol)
    assert np.allclose(sym_np, const[idx_np], atol=1e-6)

    print("KERNEL_OK")
</pallas_src>

<mosaic_0001>
module attributes {stable_mosaic.version = 11 : i64} {
  func.func @kernel(%arg0: i32, %arg1: memref<8x512xi32, #tpu.memory_space<vmem>>, %arg2: memref<4x8x512xf32, #tpu.memory_space<vmem>>, %arg3: memref<8x512xi32, #tpu.memory_space<vmem>>, %arg4: memref<8x512xf32, #tpu.memory_space<vmem>>, %arg5: memref<8x512xf32, #tpu.memory_space<vmem>>) attributes {dimension_semantics = [#tpu.dimension_semantics<arbitrary>], iteration_bounds = array<i64: 1>, scalar_prefetch = 0 : i64, scratch_operands = 0 : i64, tpu.core_type = #tpu.core_type<tc>, window_params = [{transform_indices = @transform_0, window_bounds = array<i64: 8, 512>}, {transform_indices = @transform_1, window_bounds = array<i64: 4, 8, 512>}, {transform_indices = @transform_2, window_bounds = array<i64: 8, 512>}, {transform_indices = @transform_3, window_bounds = array<i64: 8, 512>}, {transform_indices = @transform_4, window_bounds = array<i64: 8, 512>}]} {
    %c0 = arith.constant 0 : index
    %c0_0 = arith.constant 0 : index
    %0 = vector.load %arg1[%c0, %c0_0] : memref<8x512xi32, #tpu.memory_space<vmem>>, vector<8x512xi32>
    %c15_i32 = arith.constant 15 : i32
    %1 = vector.broadcast %c15_i32 : i32 to vector<8x512xi32>
    %2 = arith.andi %0, %1 : vector<8x512xi32>
    %c0_1 = arith.constant 0 : index
    %c0_2 = arith.constant 0 : index
    %3 = vector.load %arg3[%c0_1, %c0_2] : memref<8x512xi32, #tpu.memory_space<vmem>>, vector<8x512xi32>
    tpu.vector_store %arg3[%c0_1, %c0_2], %2 {strides = array<i32>} : memref<8x512xi32, #tpu.memory_space<vmem>>, vector<8x512xi32>,
    %c3_i32 = arith.constant 3 : i32
    %4 = vector.broadcast %c3_i32 : i32 to vector<8x512xi32>
    %5 = arith.shrsi %2, %4 : vector<8x512xi32>
    %c1_i32 = arith.constant 1 : i32
    %6 = vector.broadcast %c1_i32 : i32 to vector<8x512xi32>
    %7 = arith.andi %5, %6 : vector<8x512xi32>
    %8 = arith.sitofp %7 : vector<8x512xi32> to vector<8x512xf32>
    %c0_3 = arith.constant 0 : index
    %c0_4 = arith.constant 0 : index
    %c0_5 = arith.constant 0 : index
    %9 = vector.load %arg2[%c0_3, %c0_4, %c0_5] : memref<4x8x512xf32, #tpu.memory_space<vmem>>, vector<1x8x512xf32>
    %10 = vector.shape_cast %9 : vector<1x8x512xf32> to vector<8x512xf32>
    %11 = vector.shape_cast %8 : vector<8x512xf32> to vector<1x8x512xf32>
    tpu.vector_store %arg2[%c0_3, %c0_4, %c0_5], %11 {strides = array<i32>} : memref<4x8x512xf32, #tpu.memory_space<vmem>>, vector<1x8x512xf32>,
    %c2_i32 = arith.constant 2 : i32
    %12 = vector.broadcast %c2_i32 : i32 to vector<8x512xi32>
    %13 = arith.shrsi %2, %12 : vector<8x512xi32>
    %c1_i32_6 = arith.constant 1 : i32
    %14 = vector.broadcast %c1_i32_6 : i32 to vector<8x512xi32>
    %15 = arith.andi %13, %14 : vector<8x512xi32>
    %16 = arith.sitofp %15 : vector<8x512xi32> to vector<8x512xf32>
    %c1 = arith.constant 1 : index
    %c0_7 = arith.constant 0 : index
    %c0_8 = arith.constant 0 : index
    %17 = vector.load %arg2[%c1, %c0_7, %c0_8] : memref<4x8x512xf32, #tpu.memory_space<vmem>>, vector<1x8x512xf32>
    %18 = vector.shape_cast %17 : vector<1x8x512xf32> to vector<8x512xf32>
    %19 = vector.shape_cast %16 : vector<8x512xf32> to vector<1x8x512xf32>
    tpu.vector_store %arg2[%c1, %c0_7, %c0_8], %19 {strides = array<i32>} : memref<4x8x512xf32, #tpu.memory_space<vmem>>, vector<1x8x512xf32>,
    %c1_i32_9 = arith.constant 1 : i32
    %20 = vector.broadcast %c1_i32_9 : i32 to vector<8x512xi32>
    %21 = arith.shrsi %2, %20 : vector<8x512xi32>
    %c1_i32_10 = arith.constant 1 : i32
    %22 = vector.broadcast %c1_i32_10 : i32 to vector<8x512xi32>
    %23 = arith.andi %21, %22 : vector<8x512xi32>
    %24 = arith.sitofp %23 : vector<8x512xi32> to vector<8x512xf32>
    %c2 = arith.constant 2 : index
    %c0_11 = arith.constant 0 : index
    %c0_12 = arith.constant 0 : index
    %25 = vector.load %arg2[%c2, %c0_11, %c0_12] : memref<4x8x512xf32, #tpu.memory_space<vmem>>, vector<1x8x512xf32>
    %26 = vector.shape_cast %25 : vector<1x8x512xf32> to vector<8x512xf32>
    %27 = vector.shape_cast %24 : vector<8x512xf32> to vector<1x8x512xf32>
    tpu.vector_store %arg2[%c2, %c0_11, %c0_12], %27 {strides = array<i32>} : memref<4x8x512xf32, #tpu.memory_space<vmem>>, vector<1x8x512xf32>,
    %c0_i32 = arith.constant 0 : i32
    %28 = vector.broadcast %c0_i32 : i32 to vector<8x512xi32>
    %29 = arith.shrsi %2, %28 : vector<8x512xi32>
    %c1_i32_13 = arith.constant 1 : i32
    %30 = vector.broadcast %c1_i32_13 : i32 to vector<8x512xi32>
    %31 = arith.andi %29, %30 : vector<8x512xi32>
    %32 = arith.sitofp %31 : vector<8x512xi32> to vector<8x512xf32>
    %c3 = arith.constant 3 : index
    %c0_14 = arith.constant 0 : index
    %c0_15 = arith.constant 0 : index
    %33 = vector.load %arg2[%c3, %c0_14, %c0_15] : memref<4x8x512xf32, #tpu.memory_space<vmem>>, vector<1x8x512xf32>
    %34 = vector.shape_cast %33 : vector<1x8x512xf32> to vector<8x512xf32>
    %35 = vector.shape_cast %32 : vector<8x512xf32> to vector<1x8x512xf32>
    tpu.vector_store %arg2[%c3, %c0_14, %c0_15], %35 {strides = array<i32>} : memref<4x8x512xf32, #tpu.memory_space<vmem>>, vector<1x8x512xf32>,
    %c2_i32_16 = arith.constant 2 : i32
    %36 = vector.broadcast %c2_i32_16 : i32 to vector<8x512xi32>
    %37 = arith.muli %36, %23 : vector<8x512xi32>
    %c1_i32_17 = arith.constant 1 : i32
    %38 = vector.broadcast %c1_i32_17 : i32 to vector<8x512xi32>
    %39 = arith.subi %38, %37 : vector<8x512xi32>
    %40 = arith.sitofp %39 : vector<8x512xi32> to vector<8x512xf32>
    %c2_i32_18 = arith.constant 2 : i32
    %41 = vector.broadcast %c2_i32_18 : i32 to vector<8x512xi32>
    %42 = arith.muli %41, %7 : vector<8x512xi32>
    %c1_i32_19 = arith.constant 1 : i32
    %43 = vector.broadcast %c1_i32_19 : i32 to vector<8x512xi32>
    %44 = arith.subi %43, %42 : vector<8x512xi32>
    %45 = arith.sitofp %44 : vector<8x512xi32> to vector<8x512xf32>
    %cst = arith.constant 2.000000e+00 : f32
    %46 = vector.broadcast %cst : f32 to vector<8x512xf32>
    %47 = arith.subf %46, %40 : vector<8x512xf32>
    %48 = arith.mulf %45, %47 : vector<8x512xf32>
    %cst_20 = arith.constant 0.316227764 : f32
    %49 = vector.broadcast %cst_20 : f32 to vector<8x512xf32>
    %50 = arith.mulf %48, %49 : vector<8x512xf32>
    %c0_21 = arith.constant 0 : index
    %c0_22 = arith.constant 0 : index
    %51 = vector.load %arg4[%c0_21, %c0_22] : memref<8x512xf32, #tpu.memory_space<vmem>>, vector<8x512xf32>
    tpu.vector_store %arg4[%c0_21, %c0_22], %50 {strides = array<i32>} : memref<8x512xf32, #tpu.memory_space<vmem>>, vector<8x512xf32>,
    %c2_i32_23 = arith.constant 2 : i32
    %52 = vector.broadcast %c2_i32_23 : i32 to vector<8x512xi32>
    %53 = arith.muli %52, %31 : vector<8x512xi32>
    %c1_i32_24 = arith.constant 1 : i32
    %54 = vector.broadcast %c1_i32_24 : i32 to vector<8x512xi32>
    %55 = arith.subi %54, %53 : vector<8x512xi32>
    %56 = arith.sitofp %55 : vector<8x512xi32> to vector<8x512xf32>
    %c2_i32_25 = arith.constant 2 : i32
    %57 = vector.broadcast %c2_i32_25 : i32 to vector<8x512xi32>
    %58 = arith.muli %57, %15 : vector<8x512xi32>
    %c1_i32_26 = arith.constant 1 : i32
    %59 = vector.broadcast %c1_i32_26 : i32 to vector<8x512xi32>
    %60 = arith.subi %59, %58 : vector<8x512xi32>
    %61 = arith.sitofp %60 : vector<8x512xi32> to vector<8x512xf32>
    %cst_27 = arith.constant 2.000000e+00 : f32
    %62 = vector.broadcast %cst_27 : f32 to vector<8x512xf32>
    %63 = arith.subf %62, %56 : vector<8x512xf32>
    %64 = arith.mulf %61, %63 : vector<8x512xf32>
    %cst_28 = arith.constant 0.316227764 : f32
    %65 = vector.broadcast %cst_28 : f32 to vector<8x512xf32>
    %66 = arith.mulf %64, %65 : vector<8x512xf32>
    %c0_29 = arith.constant 0 : index
    %c0_30 = arith.constant 0 : index
    %67 = vector.load %arg5[%c0_29, %c0_30] : memref<8x512xf32, #tpu.memory_space<vmem>>, vector<8x512xf32>
    tpu.vector_store %arg5[%c0_29, %c0_30], %66 {strides = array<i32>} : memref<8x512xf32, #tpu.memory_space<vmem>>, vector<8x512xf32>,
    return
  }
  func.func @transform_0(%arg0: i32) -> (i32, i32) {
    %c0_i32 = arith.constant 0 : i32
    %c0_i32_0 = arith.constant 0 : i32
    return %arg0, %c0_i32 : i32, i32
  }
  func.func @transform_1(%arg0: i32) -> (i32, i32, i32) {
    %c0_i32 = arith.constant 0 : i32
    %c0_i32_0 = arith.constant 0 : i32
    %c0_i32_1 = arith.constant 0 : i32
    return %c0_i32, %arg0, %c0_i32_0 : i32, i32, i32
  }
  func.func @transform_2(%arg0: i32) -> (i32, i32) {
    %c0_i32 = arith.constant 0 : i32
    %c0_i32_0 = arith.constant 0 : i32
    return %arg0, %c0_i32 : i32, i32
  }
  func.func @transform_3(%arg0: i32) -> (i32, i32) {
    %c0_i32 = arith.constant 0 : i32
    %c0_i32_0 = arith.constant 0 : i32
    return %arg0, %c0_i32 : i32, i32
  }
  func.func @transform_4(%arg0: i32) -> (i32, i32) {
    %c0_i32 = arith.constant 0 : i32
    %c0_i32_0 = arith.constant 0 : i32
    return %arg0, %c0_i32 : i32, i32
  }
}

</mosaic_0001>

<bundles_post_ra>
// kernel: tpu_custom_call.1
= control target key start
LH: loop header
LB: loop body
LE: loop exit
PB: predicated region body
PF: predicated region fallthrough
CT: control target
= control target key end

     0   :  { %10 = vsyncpa [#allocation3], 0  ;;  %s543_s0 = inlined_call_operand.hbm [shape: s32[8,512], index: 0, kind: input, shape index: {}]   ;;  %s544_s1 = inlined_call_operand.hbm [shape: f32[4,8,512], index: 1, kind: output, shape index: {0}]   ;;  %s545_s2 = inlined_call_operand.hbm [shape: s32[8,512], index: 2, kind: output, shape index: {1}]   ;;  %s546_s3 = inlined_call_operand.hbm [shape: f32[8,512], index: 3, kind: output, shape index: {2}]   ;;  %s547_s4 = inlined_call_operand.hbm [shape: f32[8,512], index: 4, kind: output, shape index: {3}]  }
   0x1   :  { %11 = vsyncpa [#allocation4], 0 }
   0x2   :  { %12 = vsyncpa [#allocation7], 0 }
   0x3   :  { %13 = vsyncpa [#allocation10], 0  ;;  %s365_s15 = smov [#allocation2]   ;;  %s247_s19 = scalar_lea.hbm %s543_s0, 512 }
   0x4   :  { %s20_s16 = sshll.u32 %s365_s15, 4  ;;  %p248_p0 = scmp.ne.s32.totalorder %s543_s0, %s247_s19  ;;  %s21_s16 = int_to_ptr.vmem [resolvable:$true] %s20_s16 }
   0x5   :  { %p251_p1 = scmp.lt.u32.totalorder %s247_s19, %s543_s0 }
   0x7   :  { %p253_p2 = pnand %p251_p1, %p248_p0 }
   0x9   :  { %256 = shalt.err (!%p253_p2)
}
   0xa   :  { %s257_s24 = scalar_lea.vmem %s21_s16, 512  ;;  %p262_p4 = scmp.lt.s32.totalorder %s21_s16, %s21_s16 }
   0xb   :  { %p258_p3 = scmp.ne.s32.totalorder %s21_s16, %s257_s24  ;;  %p263_p5 = scmp.lt.s32.totalorder %s257_s24, %s257_s24 }
   0xd   :  { %p264_p6 = por %p263_p5, %p262_p4 }
   0xf   :  { %p265_p7 = pnand %p264_p6, %p258_p3 }
  0x11   :  { %268 = shalt.err (!%p265_p7)
}
  0x12   :  { %23 = dma.hbm_to_vmem [thread:$0]  %s543_s0, 512, %s21_s16, [#allocation3]  }
  0x13   :  { %357 = dma.done.wait [#allocation3], 512  }
  0x14   :  { %358 = vsyncadd [#allocation3], 4294966784  ;;  %s366_s27 = smov [#allocation6]   ;;  %v27_v0 = vld [vmem:[#allocation2] sm:$0xff]  ;;  %v28_v1 = vld [vmem:[#allocation2 + $0x8] sm:$0xff] }
  0x15   :  { %s200_s28 = sshll.u32 %s366_s27, 4  ;;  %v29_v2 = vld [vmem:[#allocation2 + $0x10] sm:$0xff]  ;;  %v409_v3 = vand.u32 15, %v27_v0  ;;  %v411_v4 = vand.u32 15, %v28_v1  ;;  %v30_v6 = vld [vmem:[#allocation2 + $0x18] sm:$0xff]  ;;  %s417_s28 = int_to_ptr.vmem [resolvable:$true] %s200_s28 }
  0x16   :  { %v413_v5 = vand.u32 15, %v29_v2  ;;  %v415_v7 = vand.u32 15, %v30_v6  ;;  %s269_s0 = scalar_lea.vmem %s417_s28, 512  ;;  %p274_p9 = scmp.lt.s32.totalorder %s417_s28, %s417_s28 }
  0x17   :  { %35 = vst [vmem:[#allocation6] sm:$0xff] %v409_v3  ;;  %36 = vst [vmem:[#allocation6 + $0x8] sm:$0xff] %v411_v4  ;;  %v39_v8 = vshra.s32 %v409_v3, 3  ;;  %v40_v9 = vshra.s32 %v411_v4, 3  ;;  %v55_v11 = vshra.s32 %v409_v3, 2  ;;  %v56_v13 = vshra.s32 %v411_v4, 2  ;;  %p270_p8 = scmp.ne.s32.totalorder %s417_s28, %s269_s0  ;;  %p275_p10 = scmp.lt.s32.totalorder %s269_s0, %s269_s0 }
  0x18   :  { %37 = vst [vmem:[#allocation6 + $0x10] sm:$0xff] %v413_v5  ;;  %v41_v10 = vshra.s32 %v413_v5, 3  ;;  %38 = vst [vmem:[#allocation6 + $0x18] sm:$0xff] %v415_v7  ;;  %v42_v12 = vshra.s32 %v415_v7, 3  ;;  %v57_v14 = vshra.s32 %v413_v5, 2  ;;  %v58_v15 = vshra.s32 %v415_v7, 2 }
  0x19   :  { %v431_v16 = vand.u32 1, %v39_v8  ;;  %v433_v17 = vand.u32 1, %v40_v9  ;;  %v437_v19 = vand.u32 1, %v55_v11  ;;  %p276_p11 = por %p275_p10, %p274_p9 }
  0x1a   :  { %v435_v18 = vand.u32 1, %v41_v10 }
  0x1b   :  { %p277_p12 = pnand %p276_p11, %p270_p8 }
  0x1d   :  { %280 = shalt.err (!%p277_p12)
}
  0x1e   :  { %s281_s5 = scalar_lea.hbm %s545_s2, 512 }
  0x1f   :  { %p282_p13 = scmp.ne.s32.totalorder %s545_s2, %s281_s5  ;;  %p285_p0 = scmp.lt.u32.totalorder %s281_s5, %s545_s2 }
  0x21   :  { %p287_p1 = pnand %p285_p0, %p282_p13 }
  0x23   :  { %290 = shalt.err (!%p287_p1)
}
  0x24   :  { %203 = dma.vmem_to_hbm [thread:$0]  %s417_s28, 512, %s545_s2, [#allocation7]   ;;  %v456_v20 = vand.u32 1, %v42_v12  ;;  %v458_v21 = vand.u32 1, %v56_v13  ;;  %v460_v22 = vand.u32 1, %v57_v14  ;;  %v462_v23 = vand.u32 1, %v58_v15 }
  0x25   :  { %v47_v24 = vcvt.s32.f32 %v431_v16  ;;  %v48_v25 = vcvt.s32.f32 %v433_v17  ;;  %v49_v26 = vcvt.s32.f32 %v435_v18  ;;  %v63_v27 = vcvt.s32.f32 %v437_v19  ;;  %s367_s2 = smov [#allocation5]  }
  0x26   :  { %v50_v28 = vcvt.s32.f32 %v456_v20  ;;  %v64_v29 = vcvt.s32.f32 %v458_v21  ;;  %v65_v30 = vcvt.s32.f32 %v460_v22  ;;  %v66_v31 = vcvt.s32.f32 %v462_v23  ;;  %s187_s12 = sshll.u32 %s367_s2, 4  ;;  %s486_s12 = int_to_ptr.vmem [resolvable:$true] %s187_s12 }
  0x27   :  { %51 = vst [vmem:[#allocation5] sm:$0xff] %v47_v24  ;;  %52 = vst [vmem:[#allocation5 + $0x8] sm:$0xff] %v48_v25  ;;  %v72_v32 = vshra.s32 %v409_v3, 1  ;;  %v73_v33 = vshra.s32 %v411_v4, 1  ;;  %v74_v34 = vshra.s32 %v413_v5, 1  ;;  %v75_v35 = vshra.s32 %v415_v7, 1  ;;  %p296_p3 = scmp.lt.s32.totalorder %s486_s12, %s486_s12 }
  0x28   :  { %53 = vst [vmem:[#allocation5 + $0x10] sm:$0xff] %v49_v26  ;;  %68 = vst [vmem:[#allocation5 + $0x20] sm:$0xff] %v63_v27  ;;  %v89_v36 = vand.u32 1, %v409_v3  ;;  %v90_v37 = vand.u32 1, %v411_v4  ;;  %v91_v38 = vand.u32 1, %v413_v5  ;;  %v92_v39 = vand.u32 1, %v415_v7 }
  0x29   :  { %54 = vst [vmem:[#allocation5 + $0x18] sm:$0xff] %v50_v28  ;;  %69 = vst [vmem:[#allocation5 + $0x28] sm:$0xff] %v64_v29  ;;  %v76_v40 = vand.u32 1, %v72_v32  ;;  %v77_v41 = vand.u32 1, %v73_v33  ;;  %v78_v42 = vand.u32 1, %v74_v34  ;;  %v79_v43 = vand.u32 1, %v75_v35 }
  0x2a   :  { %70 = vst [vmem:[#allocation5 + $0x30] sm:$0xff] %v65_v30  ;;  %71 = vst [vmem:[#allocation5 + $0x38] sm:$0xff] %v66_v31  ;;  %v93_v44 = vcvt.s32.f32 %v89_v36  ;;  %v94_v45 = vcvt.s32.f32 %v90_v37  ;;  %v95_v46 = vcvt.s32.f32 %v91_v38  ;;  %v96_v47 = vcvt.s32.f32 %v92_v39  ;;  %s291_s13 = scalar_lea.vmem %s486_s12, 2048 }
  0x2b   :  { %v80_v48 = vcvt.s32.f32 %v76_v40  ;;  %v81_v49 = vcvt.s32.f32 %v77_v41  ;;  %v82_v50 = vcvt.s32.f32 %v78_v42  ;;  %v83_v51 = vcvt.s32.f32 %v79_v43  ;;  %p292_p2 = scmp.ne.s32.totalorder %s486_s12, %s291_s13  ;;  %p297_p4 = scmp.lt.s32.totalorder %s291_s13, %s291_s13 }
  0x2c   :  { %98 = vst [vmem:[#allocation5 + $0x60] sm:$0xff] %v93_v44  ;;  %99 = vst [vmem:[#allocation5 + $0x68] sm:$0xff] %v94_v45  ;;  %v102_v52 = vmul.u32 2, %v76_v40  ;;  %v114_v53 = vmul.u32 2, %v431_v16 }
  0x2d   :  { %100 = vst [vmem:[#allocation5 + $0x70] sm:$0xff] %v95_v46  ;;  %101 = vst [vmem:[#allocation5 + $0x78] sm:$0xff] %v96_v47  ;;  %v103_v54 = vmul.u32 2, %v77_v41  ;;  %v115_v55 = vmul.u32 2, %v433_v17  ;;  %p298_p5 = por %p297_p4, %p296_p3 }
  0x2e   :  { %85 = vst [vmem:[#allocation5 + $0x40] sm:$0xff] %v80_v48  ;;  %86 = vst [vmem:[#allocation5 + $0x48] sm:$0xff] %v81_v49  ;;  %v106_v56 = vsub.s32 1, %v102_v52  ;;  %v118_v57 = vsub.s32 1, %v114_v53  ;;  %v104_v58 = vmul.u32 2, %v78_v42  ;;  %v116_v59 = vmul.u32 2, %v435_v18 }
  0x2f   :  { %87 = vst [vmem:[#allocation5 + $0x50] sm:$0xff] %v82_v50  ;;  %88 = vst [vmem:[#allocation5 + $0x58] sm:$0xff] %v83_v51  ;;  %p299_p6 = pnand %p298_p5, %p292_p2 }
  0x31   :  { %302 = shalt.err (!%p299_p6)
}
  0x32   :  { %s303_s16 = scalar_lea.hbm %s544_s1, 2048 }
  0x33   :  { %p304_p7 = scmp.ne.s32.totalorder %s544_s1, %s303_s16  ;;  %p307_p8 = scmp.lt.u32.totalorder %s303_s16, %s544_s1 }
  0x35   :  { %p309_p9 = pnand %p307_p8, %p304_p7 }
  0x37   :  { %312 = shalt.err (!%p309_p9)
}
  0x38   :  { %s368_s21 = smov 512   ;;  %s369_s22 = smov 32   ;;  %v107_v60 = vsub.s32 1, %v103_v54  ;;  %v119_v61 = vsub.s32 1, %v115_v55  ;;  %v105_v62 = vmul.u32 2, %v79_v43  ;;  %v117_v63 = vmul.u32 2, %v456_v20 }
  0x39   :  { %193 = dma.vmem_to_hbm [thread:$0]  %s486_s12, 2048, %s544_s1, [#allocation4], %s368_s21, %s368_s21, %s369_s22   ;;  %v110_v0 = vcvt.s32.f32 %v106_v56  ;;  %v122_v1 = vcvt.s32.f32 %v118_v57  ;;  %v108_v2 = vsub.s32 1, %v104_v58  ;;  %v120_v3 = vsub.s32 1, %v116_v59 }
  0x3a   :  { %v111_v6 = vcvt.s32.f32 %v107_v60  ;;  %v123_v8 = vcvt.s32.f32 %v119_v61  ;;  %v109_v9 = vsub.s32 1, %v105_v62  ;;  %v121_v10 = vsub.s32 1, %v117_v63  ;;  %s370_s1 = smov [#allocation8]  }
  0x3b   :  { %v126_v11 = vsub.f32 2.0, %v110_v0  ;;  %v112_v12 = vcvt.s32.f32 %v108_v2  ;;  %v124_v13 = vcvt.s32.f32 %v120_v3  ;;  %v142_v14 = vmul.u32 2, %v89_v36  ;;  %s210_s25 = sshll.u32 %s370_s1, 4  ;;  %s211_s25 = int_to_ptr.vmem [resolvable:$true] %s210_s25 }
  0x3c   :  { %v127_v15 = vsub.f32 2.0, %v111_v6  ;;  %v113_v16 = vcvt.s32.f32 %v109_v9  ;;  %v125_v17 = vcvt.s32.f32 %v121_v10  ;;  %v154_v18 = vmul.u32 2, %v437_v19  ;;  %s313_s26 = scalar_lea.vmem %s211_s25, 512  ;;  %p318_p11 = scmp.lt.s32.totalorder %s211_s25, %s211_s25 }
  0x3d   :  { %v130_v24 = vmul.f32 %v126_v11, %v122_v1  ;;  %v128_v25 = vsub.f32 2.0, %v112_v12  ;;  %v146_v20 = vsub.s32 1, %v142_v14  ;;  %v143_v26 = vmul.u32 2, %v90_v37  ;;  %p314_p10 = scmp.ne.s32.totalorder %s211_s25, %s313_s26  ;;  %p319_p12 = scmp.lt.s32.totalorder %s313_s26, %s313_s26 }
  0x3e   :  { %v131_v27 = vmul.f32 %v127_v15, %v123_v8  ;;  %v129_v28 = vsub.f32 2.0, %v113_v16  ;;  %v158_v29 = vsub.s32 1, %v154_v18  ;;  %v155_v30 = vmul.u32 2, %v458_v21 }
  0x3f   :  { %v134_v31 = vmul.f32 0.31622776, %v130_v24  ;;  %v132_v32 = vmul.f32 %v128_v25, %v124_v13  ;;  %v150_v33 = vcvt.s32.f32 %v146_v20  ;;  %v147_v34 = vsub.s32 1, %v143_v26  ;;  %p320_p13 = por %p319_p12, %p318_p11 }
  0x40   :  { %v135_v35 = vmul.f32 0.31622776, %v131_v27  ;;  %v133_v36 = vmul.f32 %v129_v28, %v125_v17  ;;  %v162_v19 = vcvt.s32.f32 %v158_v29  ;;  %v159_v40 = vsub.s32 1, %v155_v30 }
  0x41   :  { %138 = vst [vmem:[#allocation8] sm:$0xff] %v134_v31  ;;  %v136_v41 = vmul.f32 0.31622776, %v132_v32  ;;  %v166_v42 = vsub.f32 2.0, %v150_v33  ;;  %v151_v4 = vcvt.s32.f32 %v147_v34  ;;  %v144_v37 = vmul.u32 2, %v91_v38  ;;  %p321_p0 = pnand %p320_p13, %p314_p10 }
  0x42   :  { %139 = vst [vmem:[#allocation8 + $0x8] sm:$0xff] %v135_v35  ;;  %v137_v43 = vmul.f32 0.31622776, %v133_v36  ;;  %v163_v21 = vcvt.s32.f32 %v159_v40  ;;  %v156_v44 = vmul.u32 2, %v460_v22  ;;  %v145_v45 = vmul.u32 2, %v92_v39 }
  0x43   :  { %140 = vst [vmem:[#allocation8 + $0x10] sm:$0xff] %v136_v41  ;;  %v170_v46 = vmul.f32 %v166_v42, %v162_v19  ;;  %v167_v47 = vsub.f32 2.0, %v151_v4  ;;  %v148_v48 = vsub.s32 1, %v144_v37  ;;  %v157_v49 = vmul.u32 2, %v462_v23 }
  0x44   :  { %141 = vst [vmem:[#allocation8 + $0x18] sm:$0xff] %v137_v43  ;;  %v160_v50 = vsub.s32 1, %v156_v44  ;;  %v149_v51 = vsub.s32 1, %v145_v45 }
  0x45   :  { %v174_v5 = vmul.f32 0.31622776, %v170_v46  ;;  %v171_v38 = vmul.f32 %v167_v47, %v163_v21  ;;  %v152_v52 = vcvt.s32.f32 %v148_v48  ;;  %v161_v53 = vsub.s32 1, %v157_v49 }
  0x46   :  { %324 = shalt.err (!%p321_p0)
}
  0x47   :  { %s325_s0 = scalar_lea.hbm %s546_s3, 512 }
  0x48   :  { %p326_p1 = scmp.ne.s32.totalorder %s546_s3, %s325_s0  ;;  %p329_p2 = scmp.lt.u32.totalorder %s325_s0, %s546_s3 }
  0x4a   :  { %p331_p3 = pnand %p329_p2, %p326_p1 }
  0x4c   :  { %334 = shalt.err (!%p331_p3)
}
  0x4d   :  { %213 = dma.vmem_to_hbm [thread:$0]  %s211_s25, 512, %s546_s3, [#allocation7]   ;;  %v164_v7 = vcvt.s32.f32 %v160_v50  ;;  %v153_v22 = vcvt.s32.f32 %v149_v51  ;;  %178 = vst [vmem:[#allocation9] sm:$0xff] %v174_v5  ;;  %v175_v23 = vmul.f32 0.31622776, %v171_v38  ;;  %v168_v39 = vsub.f32 2.0, %v152_v52 }
  0x4e   :  { %v165_v54 = vcvt.s32.f32 %v161_v53  ;;  %s371_s9 = smov [#allocation9]  }
  0x4f   :  { %v169_v55 = vsub.f32 2.0, %v153_v22  ;;  %179 = vst [vmem:[#allocation9 + $0x8] sm:$0xff] %v175_v23  ;;  %v172_v56 = vmul.f32 %v168_v39, %v164_v7  ;;  %s220_s10 = sshll.u32 %s371_s9, 4  ;;  %s221_s10 = int_to_ptr.vmem [resolvable:$true] %s220_s10 }
  0x50   :  { %s335_s11 = scalar_lea.vmem %s221_s10, 512  ;;  %p340_p5 = scmp.lt.s32.totalorder %s221_s10, %s221_s10 }
  0x51   :  { %v173_v57 = vmul.f32 %v169_v55, %v165_v54  ;;  %v176_v58 = vmul.f32 0.31622776, %v172_v56  ;;  %p336_p4 = scmp.ne.s32.totalorder %s221_s10, %s335_s11  ;;  %p341_p6 = scmp.lt.s32.totalorder %s335_s11, %s335_s11 }
  0x53   :  { %v177_v59 = vmul.f32 0.31622776, %v173_v57  ;;  %180 = vst [vmem:[#allocation9 + $0x10] sm:$0xff] %v176_v58  ;;  %p342_p7 = por %p341_p6, %p340_p5 }
  0x55   :  { %181 = vst [vmem:[#allocation9 + $0x18] sm:$0xff] %v177_v59  ;;  %p343_p8 = pnand %p342_p7, %p336_p4 }
  0x57   :  { %346 = shalt.err (!%p343_p8)
}
  0x58   :  { %s347_s12 = scalar_lea.hbm %s547_s4, 512 }
  0x59   :  { %p348_p9 = scmp.ne.s32.totalorder %s547_s4, %s347_s12  ;;  %p351_p10 = scmp.lt.u32.totalorder %s347_s12, %s547_s4 }
  0x5b   :  { %p353_p11 = pnand %p351_p10, %p348_p9 }
  0x5d   :  { %356 = shalt.err (!%p353_p11)
}
  0x5e   :  { %223 = dma.vmem_to_hbm [thread:$0]  %s221_s10, 512, %s547_s4, [#allocation10]  }
  0x5f   :  { %359 = dma.done.wait [#allocation4], 2048  }
  0x60   :  { %360 = vsyncadd [#allocation4], 4294965248 }
  0x61   :  { %361 = dma.done.wait [#allocation7], 1024  }
  0x62   :  { %362 = vsyncadd [#allocation7], 4294966272 }
  0x63   :  { %363 = dma.done.wait [#allocation10], 512  }
  0x64   :  { %364 = vsyncadd [#allocation10], 4294966784 }
  0x65   :  { %236 = vsyncpa [#allocation3], 1 }
  0x66   :  { %237 = vsyncpa [#allocation4], 1 }
  0x67   :  { %238 = vsyncpa [#allocation7], 1 }
  0x68   :  { %239 = vsyncpa [#allocation10], 1 }

</bundles_post_ra>
